<compile_context>
chip_gen: v6e
topology: v6e:2x2x1
jax: 0.10.0
libtpu: 0.0.40
codegen_flags: <defaults>
</compile_context>

<pallas_src>
import jax
import jax.numpy as jnp
from jax.experimental import pallas as pl
from jax.experimental.pallas import tpu as pltpu


# ----------------------------------------------------------------------------
# Pallas kernel: y = x @ w + b   (the adapter Linear hot path)
# ----------------------------------------------------------------------------
def _adapter_linear_kernel(x_ref, w_ref, b_ref, o_ref):
    # x_ref: (tm, K)  w_ref: (K, N)  b_ref: (1, N)  o_ref: (tm, N)
    acc = jnp.dot(x_ref[...], w_ref[...], preferred_element_type=jnp.float32)
    o_ref[...] = (acc + b_ref[...]).astype(o_ref.dtype)


def _round_up(x, m):
    return ((x + m - 1) // m) * m


def adapter_linear(x, w, b, *, tm=None):
    """x: (M, K) f32, w: (K, N) f32, b: (N,) f32 -> (M, N) f32."""
    M, K = x.shape
    K2, N = w.shape
    assert K == K2
    assert b.shape == (N,)

    # Row tile: full M (rounded up to the 8-sublane granule) for small
    # problems -> single grid step; capped at 256 so the f32 accumulator
    # (tm x N) stays well inside the register file / VMEM budget.
    if tm is None:
        tm = min(_round_up(M, 8), 256)
    else:
        tm = _round_up(tm, 8)

    # Pad rows so the grid tiles M exactly (ragged tail handled by padding,
    # not by shrinking the tile for the whole kernel).
    M_pad = _round_up(M, tm)
    if M_pad != M:
        x = jnp.pad(x, ((0, M_pad - M), (0, 0)))

    b2 = b.reshape(1, N)
    grid_m = M_pad // tm

    # Only ask for a megacore split when there is real work to split.
    dim_sem = ("parallel",) if grid_m > 1 else ("arbitrary",)

    out = pl.pallas_call(
        _adapter_linear_kernel,
        out_shape=jax.ShapeDtypeStruct((M_pad, N), x.dtype),
        grid_spec=pltpu.PrefetchScalarGridSpec(
            num_scalar_prefetch=0,
            grid=(grid_m,),
            in_specs=[
                pl.BlockSpec((tm, K), lambda i: (i, 0)),
                pl.BlockSpec((K, N), lambda i: (0, 0)),
                pl.BlockSpec((1, N), lambda i: (0, 0)),
            ],
            out_specs=pl.BlockSpec((tm, N), lambda i: (i, 0)),
        ),
        compiler_params=pltpu.CompilerParams(
            dimension_semantics=dim_sem,
        ),
    )(x, w, b2)

    return out[:M] if M_pad != M else out


# ----------------------------------------------------------------------------
# Module wrappers (glue in plain JAX)
# ----------------------------------------------------------------------------
class AdapterD:
    def __init__(self, chunk_len=4, v_feature_dim=32, n_embd=64, n_layers=5):
        self.chunk_len = chunk_len
        self.v_feature_dim = v_feature_dim
        self.n_embd = n_embd
        self.n_layers = n_layers
        out_dim = chunk_len * v_feature_dim
        # nn.Linear(n_embd, chunk_len * v_feature_dim), zero-initialized
        # (init.zeros_ on weight and bias in the reference).  Stored
        # pre-transposed (K, N) so the kernel does x @ w directly.
        self.weight = jnp.zeros((n_embd, out_dim), jnp.float32)
        self.bias = jnp.zeros((out_dim,), jnp.float32)

    def project(self, v_features):
        """Adapter Linear: (B, T, n_embd) -> (B, T*chunk_len, v_feature_dim).

        The kernel works on a lane-dense (M, chunk_len*v_feature_dim) slab;
        the narrow v_feature_dim reshape is applied only at the very end.
        """
        B, T, E = v_features.shape
        assert E == self.n_embd
        x2d = v_features.reshape(B * T, E)
        y2d = adapter_linear(x2d, self.weight, self.bias)
        return y2d.reshape(B, T * self.chunk_len, self.v_feature_dim)

    def forward(self, v_features):
        # Reference AdapterD.forward is an identity pass-through.
        return v_features


class VoiceDecoder:
    def __init__(self, chunk_len=4, v_feature_dim=32, n_embd=64, n_layers=5):
        self.adapter = AdapterD(
            chunk_len=chunk_len,
            v_feature_dim=v_feature_dim,
            n_embd=n_embd,
            n_layers=n_layers,
        )
        # TODO(synk): vocos_backbone_l/r and head_l/r (VocosBackbone, ISTFTHead)
        # are undefined in the reference snippet and cannot be translated.

    def forward(self, features):
        # Reference VoiceDecoder.forward body is `pass`; we execute the only
        # concrete compute path implied by the module (the adapter projection)
        # so the Pallas kernel is exercised on real data.
        return self.adapter.project(features)


# ----------------------------------------------------------------------------
if __name__ == "__main__":
    # Small shapes consistent with the module: batch=2, seq=8, n_embd=64,
    # chunk_len=4, v_feature_dim=32  =>  adapter output dim = 128.
    B, T, E = 2, 8, 64
    chunk_len, v_dim = 4, 32

    key = jax.random.PRNGKey(0)
    features = jax.random.normal(key, (B, T, E), dtype=jnp.float32)

    dec = VoiceDecoder(chunk_len=chunk_len, v_feature_dim=v_dim, n_embd=E)
    out = dec.forward(features)
    out = jax.block_until_ready(out)

    assert out.shape == (B, T * chunk_len, v_dim), out.shape
    # Zero-initialized weights/bias -> output must be exactly zero.
    assert bool(jnp.all(out == 0.0))

    # Also exercise the ragged / multi-step path (M not a multiple of 8,
    # and an explicit small tile forcing >1 grid step).
    x_odd = jax.random.normal(key, (13, E), dtype=jnp.float32)
    w = jnp.zeros((E, chunk_len * v_dim), jnp.float32)
    b = jnp.zeros((chunk_len * v_dim,), jnp.float32)
    y_odd = jax.block_until_ready(adapter_linear(x_odd, w, b, tm=8))
    assert y_odd.shape == (13, chunk_len * v_dim)
    assert bool(jnp.all(y_odd == 0.0))

    print("KERNEL_OK")
</pallas_src>

<mosaic_0001>
module attributes {stable_mosaic.version = 11 : i64} {
  func.func @_adapter_linear_kernel(%arg0: i32, %arg1: memref<16x64xf32, #tpu.memory_space<vmem>>, %arg2: memref<64x128xf32, #tpu.memory_space<vmem>>, %arg3: memref<1x128xf32, #tpu.memory_space<vmem>>, %arg4: memref<16x128xf32, #tpu.memory_space<vmem>>) attributes {dimension_semantics = [#tpu.dimension_semantics<arbitrary>], iteration_bounds = array<i64: 1>, scalar_prefetch = 0 : i64, scratch_operands = 0 : i64, tpu.core_type = #tpu.core_type<tc>, window_params = [{transform_indices = @transform_0, window_bounds = array<i64: 16, 64>}, {pipeline_mode = #tpu.pipeline_mode<synchronous>, transform_indices = @transform_1, window_bounds = array<i64: 64, 128>}, {pipeline_mode = #tpu.pipeline_mode<synchronous>, transform_indices = @transform_2, window_bounds = array<i64: 1, 128>}, {transform_indices = @transform_3, window_bounds = array<i64: 16, 128>}]} {
    %c0 = arith.constant 0 : index
    %c0_0 = arith.constant 0 : index
    %0 = vector.load %arg1[%c0, %c0_0] : memref<16x64xf32, #tpu.memory_space<vmem>>, vector<16x64xf32>
    %c0_1 = arith.constant 0 : index
    %c0_2 = arith.constant 0 : index
    %1 = vector.load %arg2[%c0_1, %c0_2] : memref<64x128xf32, #tpu.memory_space<vmem>>, vector<64x128xf32>
    %cst = arith.constant dense<0.000000e+00> : vector<16x128xf32>
    %2 = tpu.matmul %0, %1, %cst {dimension_numbers = #tpu.dot_dimension_numbers<[1], [0], [0], [1], [0, 0, 1, 1], [], []>} : vector<16x64xf32>, vector<64x128xf32>, vector<16x128xf32> -> vector<16x128xf32>
    %c0_3 = arith.constant 0 : index
    %c0_4 = arith.constant 0 : index
    %3 = vector.load %arg3[%c0_3, %c0_4] : memref<1x128xf32, #tpu.memory_space<vmem>>, vector<1x128xf32>
    %4 = vector.broadcast %3 : vector<1x128xf32> to vector<16x128xf32>
    %5 = arith.addf %2, %4 : vector<16x128xf32>
    %c0_5 = arith.constant 0 : index
    %c0_6 = arith.constant 0 : index
    %6 = vector.load %arg4[%c0_5, %c0_6] : memref<16x128xf32, #tpu.memory_space<vmem>>, vector<16x128xf32>
    tpu.vector_store %arg4[%c0_5, %c0_6], %5 {strides = array<i32>} : memref<16x128xf32, #tpu.memory_space<vmem>>, vector<16x128xf32>,
    return
  }
  func.func @transform_0(%arg0: i32) -> (i32, i32) {
    %c0_i32 = arith.constant 0 : i32
    %c0_i32_0 = arith.constant 0 : i32
    return %arg0, %c0_i32 : i32, i32
  }
  func.func @transform_1(%arg0: i32) -> (i32, i32) {
    %c0_i32 = arith.constant 0 : i32
    %c0_i32_0 = arith.constant 0 : i32
    %c0_i32_1 = arith.constant 0 : i32
    return %c0_i32, %c0_i32_0 : i32, i32
  }
  func.func @transform_2(%arg0: i32) -> (i32, i32) {
    %c0_i32 = arith.constant 0 : i32
    %c0_i32_0 = arith.constant 0 : i32
    %c0_i32_1 = arith.constant 0 : i32
    return %c0_i32, %c0_i32_0 : i32, i32
  }
  func.func @transform_3(%arg0: i32) -> (i32, i32) {
    %c0_i32 = arith.constant 0 : i32
    %c0_i32_0 = arith.constant 0 : i32
    return %arg0, %c0_i32 : i32, i32
  }
}

</mosaic_0001>

<bundles_post_ra>
// kernel: tpu_custom_call.1
= control target key start
LH: loop header
LB: loop body
LE: loop exit
PB: predicated region body
PF: predicated region fallthrough
CT: control target
= control target key end

     0   :  { %8 = vsyncpa [#allocation3], 0  ;;  %s313_s0 = inlined_call_operand.hbm [shape: f32[16,64], index: 0, kind: input, shape index: {}]   ;;  %s314_s1 = inlined_call_operand.hbm [shape: f32[64,128], index: 1, kind: input, shape index: {}]   ;;  %s315_s2 = inlined_call_operand.vmem [shape: f32[1,128], index: 2, kind: input, shape index: {}]   ;;  %s316_s3 = inlined_call_operand.hbm [shape: f32[16,128], index: 3, kind: output, shape index: {}]  }
   0x1   :  { %9 = vsyncpa [#allocation6], 0 }
   0x2   :  { %10 = vsyncpa [#allocation4], 0  ;;  %s265_s12 = smov [#allocation2]  }
   0x3   :  { %s16_s13 = sshll.u32 %s265_s12, 4  ;;  %s17_s13 = int_to_ptr.vmem [resolvable:$true] %s16_s13 }
   0x4   :  { %s207_s14 = scalar_lea.vmem %s17_s13, 256  ;;  %p212_p1 = scmp.lt.s32.totalorder %s17_s13, %s17_s13 }
   0x5   :  { %p208_p0 = scmp.ne.s32.totalorder %s17_s13, %s207_s14  ;;  %p213_p2 = scmp.lt.s32.totalorder %s207_s14, %s207_s14 }
   0x7   :  { %p214_p3 = por %p213_p2, %p212_p1 }
   0x9   :  { %p215_p4 = pnand %p214_p3, %p208_p0 }
   0xb   :  { %218 = shalt.err (!%p215_p4)
}
   0xc   :  { %s266_s15 = smov 128   ;;  %s267_s16 = smov 8  }
   0xd   :  { %22 = dma.hbm_to_vmem [thread:$0]  %s313_s0, 256, %s17_s13, [#allocation3], %s266_s15, %s266_s15, %s267_s16  }
   0xe   :  { %s268_s19 = smov [#allocation5]  }
   0xf   :  { %s28_s20 = sshll.u32 %s268_s19, 4  ;;  %s29_s20 = int_to_ptr.vmem [resolvable:$true] %s28_s20 }
  0x10   :  { %s227_s21 = scalar_lea.vmem %s29_s20, 1024  ;;  %p232_p6 = scmp.lt.s32.totalorder %s29_s20, %s29_s20 }
  0x11   :  { %p228_p5 = scmp.ne.s32.totalorder %s29_s20, %s227_s21  ;;  %p233_p7 = scmp.lt.s32.totalorder %s227_s21, %s227_s21 }
  0x13   :  { %p234_p8 = por %p233_p7, %p232_p6 }
  0x15   :  { %p235_p9 = pnand %p234_p8, %p228_p5 }
  0x17   :  { %238 = shalt.err (!%p235_p9)
}
  0x18   :  { %34 = dma.hbm_to_vmem [thread:$0]  %s314_s1, 1024, %s29_s20, [#allocation6], %s266_s15, %s266_s15, %s267_s16  }
  0x19   :  { %259 = dma.done.wait [#allocation3], 256  }
  0x1a   :  { %260 = vsyncadd [#allocation3], 4294967040 }
  0x1b   :  { %261 = dma.done.wait [#allocation6], 1024  }
  0x1c   :  { %262 = vsyncadd [#allocation6], 4294966272  ;;  %v52_v0 = vld [vmem:[#allocation5 + $0x38] sm:$0xff]  ;;  %v51_v1 = vld [vmem:[#allocation5 + $0x30] sm:$0xff]  ;;  %vm60_vm0 = vcmask 523264   ;;  %s269_s24 = smov [#allocation7]  }
  0x1d   :  { %175 = vmatprep.subr.mxu0 %v52_v0  ;;  %v50_v2 = vld [vmem:[#allocation5 + $0x28] sm:$0xff]  ;;  %v43_v3 = vld [vmem:[#allocation2] sm:$0xff]  ;;  %v49_v4 = vld [vmem:[#allocation5 + $0x20] sm:$0xff]  ;;  %s149_s25 = sshll.u32 %s269_s24, 4  ;;  %s150_s25 = int_to_ptr.vmem [resolvable:$true] %s149_s25 }
  0x1e   :  { %176 = vmatpush3.msra.mxu0 %v52_v0  ;;  %191 = vmatprep.mubr.msk.f32.mxu0 %vm60_vm0, %v43_v3  ;;  %v48_v5 = vld [vmem:[#allocation5 + $0x18] sm:$0xff]  ;;  %v47_v6 = vld [vmem:[#allocation5 + $0x10] sm:$0xff]  ;;  %v46_v7 = vld [vmem:[#allocation5 + $0x8] sm:$0xff]  ;;  %s239_s26 = scalar_lea.vmem %s150_s25, 256  ;;  %p244_p11 = scmp.lt.s32.totalorder %s150_s25, %s150_s25 }
  0x1f   :  { %177 = vmatprep.subr.mxu0 %v51_v1  ;;  %v45_v8 = vld [vmem:[#allocation5] sm:$0xff]  ;;  %v44_v9 = vld [vmem:[#allocation2 + $0x8] sm:$0xff]  ;;  %v162_v10 = vld [vmem:[%s315_s2] ss:$0 sm:$0xff]  ;;  %p240_p10 = scmp.ne.s32.totalorder %s150_s25, %s239_s26  ;;  %p245_p12 = scmp.lt.s32.totalorder %s239_s26, %s239_s26 }
  0x20   :  { %178 = vmatpush3.msra.mxu0 %v51_v1 }
  0x21   :  { %179 = vmatprep.subr.mxu0 %v50_v2  ;;  %p246_p13 = por %p245_p12, %p244_p11 }
  0x22   :  { %180 = vmatpush3.msra.mxu0 %v50_v2 }
  0x23   :  { %181 = vmatprep.subr.mxu0 %v49_v4  ;;  %p247_p0 = pnand %p246_p13, %p240_p10 }
  0x24   :  { %182 = vmatpush3.msra.mxu0 %v49_v4 }
  0x25   :  { %183 = vmatprep.subr.mxu0 %v48_v5 }
  0x26   :  { %184 = vmatpush3.msra.mxu0 %v48_v5 }
  0x27   :  { %185 = vmatprep.subr.mxu0 %v47_v6 }
  0x28   :  { %186 = vmatpush3.msra.mxu0 %v47_v6 }
  0x29   :  { %187 = vmatprep.subr.mxu0 %v46_v7 }
  0x2a   :  { %188 = vmatpush3.msra.mxu0 %v46_v7 }
  0x2b   :  { %189 = vmatprep.subr.mxu0 %v45_v8 }
  0x2c   :  { %190 = vmatpush3.msra.mxu0 %v45_v8 }
  0x2d   :  { %192 = vmatmul.mubr.msk.f32.vlgmr.msra.gmra.mxu0 %vm60_vm0, %v44_v9 }
  0xed   :  { %v193_v11 = vpop.f32.mrf.mxu0 }
  0xee   :  { %v139_v12 = vadd.f32 %v193_v11, %v162_v10 }
  0xef   :  { %v133_v13 = vpop.f32.mrf.mxu0 }
  0xf0   :  { %143 = vst [vmem:[#allocation7 + $0x8] sm:$0xff] %v139_v12  ;;  %v134_v14 = vadd.f32 %v162_v10, %v133_v13 }
  0xf2   :  { %142 = vst [vmem:[#allocation7] sm:$0xff] %v134_v14 }
  0xf3   :  { %250 = shalt.err (!%p247_p0)
}
  0xf4   :  { %155 = dma.vmem_to_hbm [thread:$0]  %s150_s25, 256, %s316_s3, [#allocation4], %s266_s15, %s266_s15, %s267_s16  }
  0xf5   :  { %263 = dma.done.wait [#allocation4], 256  }
  0xf6   :  { %264 = vsyncadd [#allocation4], 4294967040 }
  0xf7   :  { %159 = vsyncpa [#allocation3], 1 }
  0xf8   :  { %160 = vsyncpa [#allocation6], 1 }
  0xf9   :  { %161 = vsyncpa [#allocation4], 1 }

</bundles_post_ra>
